<compile_context>
chip_gen: v7x
topology: tpu7x:2x2x1
jax: 0.10.0
libtpu: 0.0.40
codegen_flags: <defaults>
</compile_context>

<pallas_src>
import functools

import numpy as np
import jax
import jax.numpy as jnp
from jax import lax
from jax.experimental import pallas as pl
from jax.experimental.pallas import tpu as pltpu

_LANE = 128
_SUBLANE = 8
_WEIGHTED_MAX_LANE = 2048              # lane-tile width for the weighted kernel
_WEIGHTED_TARGET_BLOCK_BYTES = 2 << 20  # ~2 MiB per input block (weighted path)


def _round_up(a, b):
    return ((a + b - 1) // b) * b


def _device_kind():
    try:
        return jax.devices()[0].device_kind.lower()
    except Exception:
        return ""


def _num_tensorcores():
    # Chips exposing 2 TensorCores behind one JAX device (megacore-style grid
    # split via a leading "parallel" axis): v4, v5p, v7x.  v5e/v6e have 1 TC.
    kind = _device_kind()
    return 2 if any(tag in kind for tag in ("v4", "v5p", "v7", "7x", "tpu7")) else 1


def _default_max_block_rows():
    kind = _device_kind()
    if "v5 lite" in kind or "v5e" in kind or "v5lite" in kind:
        # 4096 x 128 x 4B = 2 MiB f32 block; 2 inputs x 2 bufs = 8 MiB, well
        # inside v5e's 16 MiB default scoped-VMEM limit.
        return 4096
    # 8192 x 128 x 4B = 4 MiB f32 block; 16 MiB of double buffers fits the
    # 32 MiB default scoped VMEM on v6e/v7x.
    return 8192


def spatial_discounting_mask(mask_width, mask_height, gamma):
    """Deterministic re-implementation of util.spatial_discounting_mask."""
    mask_values = np.ones((mask_width, mask_height), dtype=np.float64)
    for i in range(mask_width):
        for j in range(mask_height):
            mask_values[i, j] = max(gamma ** min(i, mask_width - i),
                                    gamma ** min(j, mask_height - j))
    # PyTorch stores (1, 1, MASK_WIDTH, MASK_HEIGHT) float32.
    return jnp.asarray(mask_values, dtype=jnp.float32)[None, None]


# -----------------------------------------------------------------------------
# Executed forward path: mean(|x - y|), unweighted.
# -----------------------------------------------------------------------------
def _abs_diff_mean_kernel(x_ref, y_ref, o_ref, acc_ref, *,
                          inv_n, rows, tm, blocks_per_split, mask_rows):
    s = pl.program_id(0)
    t = pl.program_id(1)

    @pl.when(t == 0)
    def _():
        acc_ref[...] = jnp.zeros_like(acc_ref)

    # Subtract/abs in the input dtype (bf16 stays packed on v6e/v7x); widen to
    # f32 only inside the add-reduce — no full f32 copy of the block.
    d = jnp.abs(x_ref[...] - y_ref[...])
    if mask_rows:
        # Partial last block / phantom blocks of an uneven core split: zero
        # rows beyond the logical extent.  Pure VPU ops; kernel is HBM-bound.
        gb = s * blocks_per_split + t
        row_ids = gb * tm + lax.broadcasted_iota(jnp.int32, (tm, 1), 0)
        d = jnp.where(row_ids < rows, d, jnp.zeros((), d.dtype))
    # Fold the (tm, 128) block into the (8, 128) vreg-shaped accumulator:
    # pure VPU adds, no per-step cross-lane reduce, no SMEM round-trip.
    acc_ref[...] += jnp.sum(d.reshape(-1, _SUBLANE, _LANE), axis=0,
                            dtype=jnp.float32)

    @pl.when(t == pl.num_programs(1) - 1)
    def _():
        # Fuse the division by numel into the finalize.
        o_ref[0] = acc_ref[...] * inv_n


def l1_mean(x, y, *, max_block_rows=None):
    """mean(|x - y|) over all elements via a lane-dense Pallas reduction."""
    assert x.shape == y.shape, (x.shape, y.shape)
    n = x.size
    assert n > 0
    itemsize = jnp.dtype(x.dtype).itemsize

    xf = x.reshape(-1)
    yf = y.reshape(-1)

    rem = n % _LANE
    if rem:
        # TODO(synk): a lane tail (< 128 elements) still needs a pad-copy to
        # make the (rows, 128) reshape legal; handle it with a tiny tail
        # kernel if this path ever becomes hot (images usually have n%128==0).
        xf = jnp.pad(xf, (0, _LANE - rem))
        yf = jnp.pad(yf, (0, _LANE - rem))
    rows = -(-n // _LANE)                      # ceil(n / 128)
    x2 = xf.reshape(rows, _LANE)               # free reshape when n % 128 == 0
    y2 = yf.reshape(rows, _LANE)

    cap = _default_max_block_rows() if max_block_rows is None else max_block_rows
    cap = max(_SUBLANE, (cap // _SUBLANE) * _SUBLANE)
    tm = min(cap, _round_up(rows, _SUBLANE))
    n_blocks = -(-rows // tm)

    n_splits = _num_tensorcores() if n_blocks >= 2 else 1
    blocks_per_split = -(-n_blocks // n_splits)
    # Mask whenever the last real block is partial or the split has phantoms.
    mask_rows = (rows % tm != 0) or (n_splits * blocks_per_split != n_blocks)

    T = blocks_per_split
    last_block = n_blocks - 1

    def in_map(s, t):
        # Clamp phantom blocks of an uneven split onto the last real block;
        # their contribution is masked to zero inside the kernel.
        return (jnp.minimum(s * T + t, last_block), 0)

    kernel = functools.partial(
        _abs_diff_mean_kernel, inv_n=1.0 / float(n), rows=rows, tm=tm,
        blocks_per_split=T, mask_rows=mask_rows)

    partials = pl.pallas_call(
        kernel,
        out_shape=jax.ShapeDtypeStruct((n_splits, _SUBLANE, _LANE), jnp.float32),
        grid_spec=pltpu.PrefetchScalarGridSpec(
            num_scalar_prefetch=0,
            grid=(n_splits, T),                            # reduction axis last
            in_specs=[
                pl.BlockSpec((tm, _LANE), in_map),
                pl.BlockSpec((tm, _LANE), in_map),
            ],
            out_specs=pl.BlockSpec((1, _SUBLANE, _LANE), lambda s, t: (s, 0, 0)),
            scratch_shapes=[pltpu.VMEM((_SUBLANE, _LANE), jnp.float32)],
        ),
        compiler_params=pltpu.CompilerParams(
            dimension_semantics=("parallel", "arbitrary")),
        cost_estimate=pl.CostEstimate(
            flops=3 * n, transcendentals=0,
            bytes_accessed=2 * n * itemsize + n_splits * _SUBLANE * _LANE * 4),
    )(x2, y2)
    # Single tiny cross-lane reduce (at most 2 x 8 x 128 f32) outside the loop.
    return jnp.sum(partials)


# -----------------------------------------------------------------------------
# "Intended" (never-executed in PyTorch) discounted branch: weighted L1.
# -----------------------------------------------------------------------------
def _weighted_abs_diff_kernel(x_ref, y_ref, w_ref, o_ref, acc_ref, *,
                              scale, rows, hw, tm, tn, mask_rows, mask_lanes):
    j = pl.program_id(0)   # lane tile (independent / parallel)
    t = pl.program_id(1)   # row block (reduction, last)

    @pl.when(t == 0)
    def _():
        acc_ref[...] = jnp.zeros_like(acc_ref)

    d = jnp.abs(x_ref[...] - y_ref[...])
    if mask_rows:
        row_ids = t * tm + lax.broadcasted_iota(jnp.int32, (tm, 1), 0)
        d = jnp.where(row_ids < rows, d, jnp.zeros((), d.dtype))
    if mask_lanes:
        lane_ids = j * tn + lax.broadcasted_iota(jnp.int32, (1, tn), 1)
        d = jnp.where(lane_ids < hw, d, jnp.zeros((), d.dtype))
    # Weight is pre-broadcast to (8, tn): the multiply is vreg-aligned
    # (no per-step sublane broadcast / relayout).
    dw = d.reshape(-1, _SUBLANE, tn).astype(jnp.float32) * w_ref[...]
    acc_ref[...] += jnp.sum(dw, axis=0)

    @pl.when(t == pl.num_programs(1) - 1)
    def _():
        o_ref[0] = acc_ref[...] * scale


def weighted_l1(x, y, w2d, *, size_average=True, max_block_rows=None):
    """sum/mean of |x - y| * w2d with x, y: (B, C, H, W), w2d: (H, W)."""
    assert x.shape == y.shape, (x.shape, y.shape)
    B, C, H, W = x.shape
    hw = H * W
    rows = B * C
    n = x.size
    itemsize = jnp.dtype(x.dtype).itemsize

    x2 = x.reshape(rows, hw)
    y2 = y.reshape(rows, hw)

    # Lane tiling: keeps VMEM bounded for arbitrarily large images and lifts
    # the old H*W % 128 == 0 restriction (partial lane tile is masked).
    if hw <= _WEIGHTED_MAX_LANE:
        tn = hw                      # full-extent lane dim (always legal)
        n_lane_tiles = 1
        mask_lanes = False
    else:
        tn = _WEIGHTED_MAX_LANE
        n_lane_tiles = -(-hw // tn)
        mask_lanes = (hw % tn) != 0
    hw_pad = n_lane_tiles * tn

    # Weight: pre-broadcast to 8 sublanes and zero-pad the lane tail; the
    # weight is tiny so this copy is free.
    w = w2d.reshape(1, hw).astype(jnp.float32)
    if hw_pad != hw:
        w = jnp.pad(w, ((0, 0), (0, hw_pad - hw)))
    w8 = jnp.broadcast_to(w, (_SUBLANE, hw_pad))

    cap = (max_block_rows if max_block_rows is not None
           else max(_SUBLANE, _WEIGHTED_TARGET_BLOCK_BYTES // (tn * itemsize)))
    cap = max(_SUBLANE, (cap // _SUBLANE) * _SUBLANE)
    tm = min(cap, _round_up(rows, _SUBLANE))
    n_row_blocks = -(-rows // tm)
    mask_rows = (rows % tm) != 0

    scale = (1.0 / float(n)) if size_average else 1.0
    kernel = functools.partial(
        _weighted_abs_diff_kernel, scale=scale, rows=rows, hw=hw,
        tm=tm, tn=tn, mask_rows=mask_rows, mask_lanes=mask_lanes)

    partials = pl.pallas_call(
        kernel,
        out_shape=jax.ShapeDtypeStruct((n_lane_tiles, _SUBLANE, tn), jnp.float32),
        grid_spec=pltpu.PrefetchScalarGridSpec(
            num_scalar_prefetch=0,
            grid=(n_lane_tiles, n_row_blocks),             # reduction axis last
            in_specs=[
                pl.BlockSpec((tm, tn), lambda j, t: (t, j)),
                pl.BlockSpec((tm, tn), lambda j, t: (t, j)),
                pl.BlockSpec((_SUBLANE, tn), lambda j, t: (0, j)),
            ],
            out_specs=pl.BlockSpec((1, _SUBLANE, tn), lambda j, t: (j, 0, 0)),
            scratch_shapes=[pltpu.VMEM((_SUBLANE, tn), jnp.float32)],
        ),
        compiler_params=pltpu.CompilerParams(
            dimension_semantics=("parallel", "arbitrary")),
        cost_estimate=pl.CostEstimate(
            flops=4 * n, transcendentals=0,
            bytes_accessed=(2 * n * itemsize + _SUBLANE * hw_pad * 4
                            + n_lane_tiles * _SUBLANE * tn * 4)),
    )(x2, y2, w8)
    return jnp.sum(partials)


# -----------------------------------------------------------------------------
# Module wrapper.
# -----------------------------------------------------------------------------
class DiscountedL1:
    """JAX/Pallas equivalent of util.Discounted_L1."""

    def __init__(self, mask_width, mask_height, gamma,
                 size_average=True, reduce=True):
        self.reduce = reduce
        self.size_average = size_average
        self.discounting_mask = spatial_discounting_mask(
            mask_width, mask_height, gamma)  # (1, 1, MW, MH) float32

    def __call__(self, input, target):
        # target never requires grad (asserted in the PyTorch module), so the
        # executed branch is plain l1_loss(input, target) with 'mean'
        # reduction; the discounting mask is NOT applied here.
        return l1_mean(input, target)

    def discounted(self, input, target):
        # The intended-but-never-executed branch of _pointwise_loss, exposed
        # for completeness and to exercise the weighted kernel.
        H, W = input.shape[-2], input.shape[-1]
        mw, mh = self.discounting_mask.shape[-2], self.discounting_mask.shape[-1]
        assert (mw, mh) == (H, W), (
            "discounting mask spatial dims must match the input's (H, W)")
        if not self.reduce:
            # TODO(synk): non-reduced path would return the full weighted map;
            # kept reduced-only since the executed PyTorch path always reduces.
            raise NotImplementedError("reduce=False path not implemented")
        return weighted_l1(input, target, self.discounting_mask[0, 0],
                           size_average=self.size_average)


if __name__ == "__main__":
    # args.MASK_WIDTH = args.MASK_HEIGHT = 16, SPATIAL_DISCOUNTING_GAMMA = 0.9
    B, C, H, W = 2, 4, 16, 16
    key = jax.random.PRNGKey(0)
    k1, k2, k3, k4 = jax.random.split(key, 4)
    x = jax.random.normal(k1, (B, C, H, W), dtype=jnp.float32)
    y = jax.random.normal(k2, (B, C, H, W), dtype=jnp.float32)

    loss_fn = DiscountedL1(mask_width=W, mask_height=H, gamma=0.9)

    # Forward (exactly matches the PyTorch executed path: mean L1).
    out = jax.block_until_ready(loss_fn(x, y))
    ref = jnp.mean(jnp.abs(x - y))
    assert jnp.allclose(out, ref, rtol=1e-5, atol=1e-6), (out, ref)

    # Intended (never-executed) discounted branch: weighted mean L1.
    out_disc = jax.block_until_ready(loss_fn.discounted(x, y))
    ref_disc = jnp.mean(jnp.abs(x - y) * loss_fn.discounting_mask)
    assert jnp.allclose(out_disc, ref_disc, rtol=1e-5, atol=1e-6), (out_disc, ref_disc)

    # Exercise the no-pad path: partial last row block, odd block count split,
    # and the <128-element lane tail, with a small forced block size.
    xb = jax.random.normal(k3, (3, 5, 24, 24), dtype=jnp.float32)
    yb = jax.random.normal(k4, (3, 5, 24, 24), dtype=jnp.float32)
    out_b = jax.block_until_ready(l1_mean(xb, yb, max_block_rows=16))
    ref_b = jnp.mean(jnp.abs(xb - yb))
    assert jnp.allclose(out_b, ref_b, rtol=1e-5, atol=1e-6), (out_b, ref_b)

    # Weighted path with H*W not a multiple of 128 (previously asserted out)
    # and more than one row block (row masking on the last block).
    xm = jax.random.normal(k3, (3, 4, 20, 20), dtype=jnp.float32)
    ym = jax.random.normal(k4, (3, 4, 20, 20), dtype=jnp.float32)
    wm = spatial_discounting_mask(20, 20, 0.9)[0, 0]
    out_w = jax.block_until_ready(weighted_l1(xm, ym, wm, max_block_rows=8))
    ref_w = jnp.mean(jnp.abs(xm - ym) * wm[None, None])
    assert jnp.allclose(out_w, ref_w, rtol=1e-5, atol=1e-6), (out_w, ref_w)

    print("KERNEL_OK")
</pallas_src>

<mosaic_0001>
module attributes {stable_mosaic.version = 11 : i64} {
  func.func @_abs_diff_mean_kernel(%arg0: i32, %arg1: i32, %arg2: memref<16x128xf32, #tpu.memory_space<vmem>>, %arg3: memref<16x128xf32, #tpu.memory_space<vmem>>, %arg4: memref<1x8x128xf32, #tpu.memory_space<vmem>>, %arg5: memref<8x128xf32, #tpu.memory_space<vmem>>) attributes {dimension_semantics = [#tpu.dimension_semantics<parallel>, #tpu.dimension_semantics<arbitrary>], iteration_bounds = array<i64: 1, 1>, scalar_prefetch = 0 : i64, scratch_operands = 1 : i64, tpu.core_type = #tpu.core_type<tc>, window_params = [{transform_indices = @transform_0, window_bounds = array<i64: 16, 128>}, {transform_indices = @transform_1, window_bounds = array<i64: 16, 128>}, {transform_indices = @transform_2, window_bounds = array<i64: 1, 8, 128>}]} {
    %c0_i32 = arith.constant 0 : i32
    %0 = arith.cmpi eq, %arg1, %c0_i32 : i32
    %1 = arith.extui %0 : i1 to i32
    %c0_i32_0 = arith.constant 0 : i32
    %2 = arith.cmpi ne, %1, %c0_i32_0 : i32
    scf.if %2 {
      %cst_10 = arith.constant 0.000000e+00 : f32
      %15 = vector.broadcast %cst_10 : f32 to vector<8x128xf32>
      %c0_11 = arith.constant 0 : index
      %c0_12 = arith.constant 0 : index
      %16 = vector.load %arg5[%c0_11, %c0_12] : memref<8x128xf32, #tpu.memory_space<vmem>>, vector<8x128xf32>
      tpu.vector_store %arg5[%c0_11, %c0_12], %15 {strides = array<i32>} : memref<8x128xf32, #tpu.memory_space<vmem>>, vector<8x128xf32>,
    } else {
    }
    %c0 = arith.constant 0 : index
    %c0_1 = arith.constant 0 : index
    %3 = vector.load %arg2[%c0, %c0_1] : memref<16x128xf32, #tpu.memory_space<vmem>>, vector<16x128xf32>
    %c0_2 = arith.constant 0 : index
    %c0_3 = arith.constant 0 : index
    %4 = vector.load %arg3[%c0_2, %c0_3] : memref<16x128xf32, #tpu.memory_space<vmem>>, vector<16x128xf32>
    %5 = arith.subf %3, %4 : vector<16x128xf32>
    %6 = math.absf %5 : vector<16x128xf32>
    %c0_4 = arith.constant 0 : index
    %c0_5 = arith.constant 0 : index
    %7 = vector.load %arg5[%c0_4, %c0_5] : memref<8x128xf32, #tpu.memory_space<vmem>>, vector<8x128xf32>
    %8 = vector.shape_cast %6 : vector<16x128xf32> to vector<2x8x128xf32>
    %cst = arith.constant dense<0.000000e+00> : vector<8x128xf32>
    %9 = vector.multi_reduction <add>, %8, %cst [0] : vector<2x8x128xf32> to vector<8x128xf32>
    %10 = arith.addf %7, %9 : vector<8x128xf32>
    %c0_6 = arith.constant 0 : index
    %c0_7 = arith.constant 0 : index
    %11 = vector.load %arg5[%c0_6, %c0_7] : memref<8x128xf32, #tpu.memory_space<vmem>>, vector<8x128xf32>
    tpu.vector_store %arg5[%c0_6, %c0_7], %10 {strides = array<i32>} : memref<8x128xf32, #tpu.memory_space<vmem>>, vector<8x128xf32>,
    %c0_i32_8 = arith.constant 0 : i32
    %12 = arith.cmpi eq, %arg1, %c0_i32_8 : i32
    %13 = arith.extui %12 : i1 to i32
    %c0_i32_9 = arith.constant 0 : i32
    %14 = arith.cmpi ne, %13, %c0_i32_9 : i32
    scf.if %14 {
      %c0_10 = arith.constant 0 : index
      %c0_11 = arith.constant 0 : index
      %15 = vector.load %arg5[%c0_10, %c0_11] : memref<8x128xf32, #tpu.memory_space<vmem>>, vector<8x128xf32>
      %cst_12 = arith.constant 4.8828125E-4 : f32
      %16 = vector.broadcast %cst_12 : f32 to vector<8x128xf32>
      %17 = arith.mulf %15, %16 : vector<8x128xf32>
      %c0_13 = arith.constant 0 : index
      %c0_14 = arith.constant 0 : index
      %c0_15 = arith.constant 0 : index
      %18 = vector.load %arg4[%c0_13, %c0_14, %c0_15] : memref<1x8x128xf32, #tpu.memory_space<vmem>>, vector<1x8x128xf32>
      %19 = vector.shape_cast %18 : vector<1x8x128xf32> to vector<8x128xf32>
      %20 = vector.shape_cast %17 : vector<8x128xf32> to vector<1x8x128xf32>
      tpu.vector_store %arg4[%c0_13, %c0_14, %c0_15], %20 {strides = array<i32>} : memref<1x8x128xf32, #tpu.memory_space<vmem>>, vector<1x8x128xf32>,
    } else {
    }
    return
  }
  func.func @transform_0(%arg0: i32, %arg1: i32) -> (i32, i32) {
    %c1_i32 = arith.constant 1 : i32
    %0 = arith.muli %arg0, %c1_i32 : i32
    %1 = arith.addi %0, %arg1 : i32
    %c0_i32 = arith.constant 0 : i32
    %2 = arith.minsi %1, %c0_i32 : i32
    %c0_i32_0 = arith.constant 0 : i32
    %c0_i32_1 = arith.constant 0 : i32
    return %2, %c0_i32_0 : i32, i32
  }
  func.func @transform_1(%arg0: i32, %arg1: i32) -> (i32, i32) {
    %c1_i32 = arith.constant 1 : i32
    %0 = arith.muli %arg0, %c1_i32 : i32
    %1 = arith.addi %0, %arg1 : i32
    %c0_i32 = arith.constant 0 : i32
    %2 = arith.minsi %1, %c0_i32 : i32
    %c0_i32_0 = arith.constant 0 : i32
    %c0_i32_1 = arith.constant 0 : i32
    return %2, %c0_i32_0 : i32, i32
  }
  func.func @transform_2(%arg0: i32, %arg1: i32) -> (i32, i32, i32) {
    %c0_i32 = arith.constant 0 : i32
    %c0_i32_0 = arith.constant 0 : i32
    %c0_i32_1 = arith.constant 0 : i32
    return %arg0, %c0_i32, %c0_i32_0 : i32, i32, i32
  }
}

</mosaic_0001>

<bundles_post_ra>
// kernel: tpu_custom_call.1
= control target key start
LH: loop header
LB: loop body
LE: loop exit
PB: predicated region body
PF: predicated region fallthrough
CT: control target
= control target key end

     0   :  { %7 = vsyncpa [#allocation4], 0  ;;  %s236_s0 = inlined_call_operand.hbm [shape: f32[16,128], index: 0, kind: input, shape index: {}]   ;;  %s237_s1 = inlined_call_operand.hbm [shape: f32[16,128], index: 1, kind: input, shape index: {}]   ;;  %s238_s2 = inlined_call_operand.hbm [shape: f32[1,8,128], index: 2, kind: output, shape index: {}]  }
   0x1   :  { %8 = vsyncpa [#allocation7], 0 }
   0x2   :  { %9 = vsyncpa [#allocation5], 0  ;;  %s180_s9 = smov [#allocation3]   ;;  %s108_s13 = scalar_lea.hbm %s236_s0, 256 }
   0x3   :  { %s21_s10 = sshll.u32 %s180_s9, 4  ;;  %p109_p0 = scmp.ne.s32.totalorder %s236_s0, %s108_s13  ;;  %s22_s10 = int_to_ptr.vmem [resolvable:$true] %s21_s10 }
   0x4   :  { %p112_p1 = scmp.lt.u32.totalorder %s108_s13, %s236_s0 }
   0x6   :  { %p114_p2 = pnand %p112_p1, %p109_p0 }
   0x8   :  { %117 = shalt.err (!%p114_p2)
}
   0x9   :  { %s118_s18 = scalar_lea.vmem %s22_s10, 256  ;;  %p123_p4 = scmp.lt.s32.totalorder %s22_s10, %s22_s10 }
   0xa   :  { %p119_p3 = scmp.ne.s32.totalorder %s22_s10, %s118_s18  ;;  %p124_p5 = scmp.lt.s32.totalorder %s118_s18, %s118_s18 }
   0xc   :  { %p125_p6 = por %p124_p5, %p123_p4 }
   0xe   :  { %p126_p7 = pnand %p125_p6, %p119_p3 }
  0x10   :  { %129 = shalt.err (!%p126_p7)
}
  0x11   :  { %s181_s19 = smov 128   ;;  %s182_s20 = smov 8  }
  0x12   :  { %27 = dma.hbm_to_vmem [thread:$0]  %s236_s0, 256, %s22_s10, [#allocation4], %s181_s19, %s181_s19, %s182_s20  }
  0x13   :  { %s183_s23 = smov [#allocation6]   ;;  %s130_s27 = scalar_lea.hbm %s237_s1, 256 }
  0x14   :  { %s39_s24 = sshll.u32 %s183_s23, 4  ;;  %p131_p8 = scmp.ne.s32.totalorder %s237_s1, %s130_s27  ;;  %s40_s24 = int_to_ptr.vmem [resolvable:$true] %s39_s24 }
  0x15   :  { %p134_p9 = scmp.lt.u32.totalorder %s130_s27, %s237_s1 }
  0x17   :  { %p136_p10 = pnand %p134_p9, %p131_p8 }
  0x19   :  { %139 = shalt.err (!%p136_p10)
}
  0x1a   :  { %s140_s4 = scalar_lea.vmem %s40_s24, 256  ;;  %p145_p12 = scmp.lt.s32.totalorder %s40_s24, %s40_s24 }
  0x1b   :  { %p141_p11 = scmp.ne.s32.totalorder %s40_s24, %s140_s4  ;;  %p146_p13 = scmp.lt.s32.totalorder %s140_s4, %s140_s4 }
  0x1d   :  { %p147_p0 = por %p146_p13, %p145_p12 }
  0x1f   :  { %p148_p1 = pnand %p147_p0, %p141_p11 }
  0x21   :  { %151 = shalt.err (!%p148_p1)
}
  0x22   :  { %45 = dma.hbm_to_vmem [thread:$0]  %s237_s1, 256, %s40_s24, [#allocation7], %s181_s19, %s181_s19, %s182_s20  }
  0x23   :  { %174 = dma.done.wait [#allocation4], 256  }
  0x24   :  { %175 = vsyncadd [#allocation4], 4294967040 }
  0x25   :  { %176 = dma.done.wait [#allocation7], 256  }
  0x26   :  { %177 = vsyncadd [#allocation7], 4294967040  ;;  %v65_v0 = vld [vmem:[#allocation3] sm:$0xff]  ;;  %v66_v1 = vld [vmem:[#allocation3 + $0x8] sm:$0xff]  ;;  %s184_s6 = smov [#allocation8]  }
  0x27   :  { %v67_v2 = vld [vmem:[#allocation6] sm:$0xff]  ;;  %v68_v3 = vld [vmem:[#allocation6 + $0x8] sm:$0xff]  ;;  %s89_s7 = sshll.u32 %s184_s6, 4  ;;  %s90_s7 = int_to_ptr.vmem [resolvable:$true] %s89_s7 }
  0x28   :  { %v69_v4 = vsub.f32 %v65_v0, %v67_v2  ;;  %v70_v5 = vsub.f32 %v66_v1, %v68_v3  ;;  %s152_s8 = scalar_lea.vmem %s90_s7, 128  ;;  %p157_p3 = scmp.lt.s32.totalorder %s90_s7, %s90_s7 }
  0x29   :  { %p153_p2 = scmp.ne.s32.totalorder %s90_s7, %s152_s8  ;;  %p158_p4 = scmp.lt.s32.totalorder %s152_s8, %s152_s8 }
  0x2a   :  { %v71_v6 = vand.u32 2147483647, %v69_v4  ;;  %v72_v7 = vand.u32 2147483647, %v70_v5 }
  0x2b   :  { %p159_p5 = por %p158_p4, %p157_p3 }
  0x2c   :  { %v74_v8 = vadd.f32 %v72_v7, %v71_v6 }
  0x2d   :  { %p160_p6 = pnand %p159_p5, %p153_p2 }
  0x2e   :  { %v81_v9 = vmul.f32 0.00048828125, %v74_v8 }
  0x30   :  { %82 = vst [vmem:[#allocation8] sm:$0xff] %v81_v9 }
  0x31   :  { %163 = shalt.err (!%p160_p6)
}
  0x32   :  { %s164_s10 = scalar_lea.hbm %s238_s2, 128 }
  0x33   :  { %p165_p7 = scmp.ne.s32.totalorder %s238_s2, %s164_s10  ;;  %p168_p8 = scmp.lt.u32.totalorder %s164_s10, %s238_s2 }
  0x35   :  { %p170_p9 = pnand %p168_p8, %p165_p7 }
  0x37   :  { %173 = shalt.err (!%p170_p9)
}
  0x38   :  { %92 = dma.vmem_to_hbm [thread:$0]  %s90_s7, 128, %s238_s2, [#allocation5]  }
  0x39   :  { %178 = dma.done.wait [#allocation5], 128  }
  0x3a   :  { %179 = vsyncadd [#allocation5], 4294967168 }
  0x3b   :  { %96 = vsyncpa [#allocation4], 1 }
  0x3c   :  { %97 = vsyncpa [#allocation7], 1 }
  0x3d   :  { %98 = vsyncpa [#allocation5], 1 }

</bundles_post_ra>
